<compile_context>
chip_gen: v7x
topology: tpu7x:2x2x1
jax: 0.10.0
libtpu: 0.0.40
codegen_flags: <defaults>
</compile_context>

<pallas_src>
import functools

import jax
import jax.numpy as jnp
from jax.experimental import pallas as pl
from jax.experimental.pallas import tpu as pltpu

BN_EPS = 1e-5
LEAKY_SLOPE = 0.1
LANE = 128
PACK_K_MAX = 512          # pack taps into the contraction dim when KH*KW*Cin <= this


def _round_up(x, m):
    return (x + m - 1) // m * m


def _vmem_limit_bytes():
    # ~75% of physical VMEM: ~48 MiB on v7x (64 MiB), ~96 MiB on v5e/v6e (128 MiB).
    try:
        cap = int(pltpu.get_tpu_info().vmem_capacity_bytes)
    except Exception:
        cap = 64 << 20
    return min(cap * 3 // 4, 96 << 20)


@functools.partial(jax.jit, static_argnums=(4, 5))
def conv_bn_act_block(x_nchw, weight_oihw, bn_gamma, bn_beta, stride, padding):
    """Forward of ConvBnActBlock: conv(no bias) -> BN(batch stats) -> LeakyReLU(0.1).

    x_nchw:      [N, Cin, H, W]       (PyTorch layout)
    weight_oihw: [Cout, Cin, KH, KW]  (PyTorch conv layout)
    """
    n, cin, h, w = x_nchw.shape
    cout, _, kh, kw = weight_oihw.shape
    s = int(stride)

    hp, wp = h + 2 * padding, w + 2 * padding
    oh = (hp - kh) // s + 1
    ow = (wp - kw) // s + 1

    cout_p = _round_up(cout, LANE)            # lane-padded channel count
    ct = 256 if cout_p % 256 == 0 else 128    # v6e/v7x: full 256-wide MXU tile when possible
    nct = cout_p // ct

    vmem_limit = _vmem_limit_bytes()
    row_cap = 1024 if vmem_limit > (60 << 20) else 512   # bigger tiles on 128 MiB-VMEM chips

    lf = oh * wp                              # flat GEMM rows per image (incl. wrap columns)
    rt = min(_round_up(lf, 8), row_cap)       # row tile (multiple of 8)
    nrt = -(-lf // rt)
    lf_pad = nrt * rt
    max_start = (kh - 1) * wp + (kw - 1)      # largest tap offset into the flat image
    f_rows = max_start + s * (lf_pad - 1) + 1 # flat rows needed so every tap window is in-bounds
    kdim = kh * kw * cin                      # packed contraction depth
    packed = kdim <= PACK_K_MAX

    # ---- activations: NCHW -> NHWC -> spatial pad -> flatten (H,W) -> bf16 ----
    x_nhwc = jnp.transpose(x_nchw, (0, 2, 3, 1))
    x_pad = jnp.pad(x_nhwc, ((0, 0), (padding, padding), (padding, padding), (0, 0)))
    x_flat = x_pad.reshape(n, hp * wp, cin)
    if f_rows > hp * wp:
        x_flat = jnp.pad(x_flat, ((0, 0), (0, f_rows - hp * wp), (0, 0)))
    x_flat = x_flat.astype(jnp.bfloat16)

    # ---- validity mask of flat rows (wrap columns + lf padding must not feed BN stats) ----
    # Kept as a tiny [lf_pad, 1] input (proven lowering path) rather than in-kernel iota+mod.
    ridx = jnp.arange(lf_pad)
    row_mask = (((ridx % wp) < ow) & (ridx < lf)).astype(jnp.float32).reshape(lf_pad, 1)

    inv_m = 1.0 / float(n * oh * ow)          # biased 1/M variance over (N, H, W)

    cp3 = pltpu.CompilerParams(
        dimension_semantics=("parallel", "parallel", "parallel"),
        vmem_limit_bytes=vmem_limit)
    cp2 = pltpu.CompilerParams(
        dimension_semantics=("parallel", "parallel"),
        vmem_limit_bytes=vmem_limit)

    # ================= pass 1: convolution + per-tile partial BN stats =================
    def _emit_stats(stats_ref, acc, mask):
        masked = acc * mask
        stats_ref[0, 0, 0:1, :] = jnp.sum(masked, axis=0, keepdims=True)         # sum
        stats_ref[0, 0, 1:2, :] = jnp.sum(masked * acc, axis=0, keepdims=True)   # sum of squares

    if packed:
        # prologue im2col of the small-Cin input: [N, lf_pad, KH*KW*Cin] bf16
        taps = []
        for i in range(kh):
            for j in range(kw):
                start = i * wp + j
                taps.append(jax.lax.slice_in_dim(
                    x_flat, start, start + s * (lf_pad - 1) + 1, stride=s, axis=1))
        patches = jnp.concatenate(taps, axis=-1)
        w_flat = jnp.transpose(weight_oihw, (2, 3, 1, 0)).reshape(kdim, cout)
        w_flat = jnp.pad(w_flat, ((0, 0), (0, cout_p - cout))).astype(jnp.bfloat16)

        def conv_stats_kernel(p_ref, w_ref, mask_ref, y_ref, stats_ref):
            # one big-K MXU matmul per (image, row-tile, cout-tile)
            acc = jnp.dot(p_ref[0], w_ref[...], preferred_element_type=jnp.float32)
            y_ref[0] = acc.astype(jnp.bfloat16)                   # bf16 intermediate
            _emit_stats(stats_ref, acc, mask_ref[...])

        first_in = patches
        first_spec = pl.BlockSpec((1, rt, kdim), lambda b, r, c: (b, r, 0))
        w_in = w_flat
        w_spec = pl.BlockSpec((kdim, ct), lambda b, r, c: (0, c))
        scratch = []
    else:
        # large-Cin fallback: shift-and-matmul accumulation (K = Cin already feeds the MXU);
        # the whole flat image stays resident across row tiles (no KH*KW HBM blow-up).
        w_taps = jnp.transpose(weight_oihw, (2, 3, 1, 0)).reshape(kh * kw, cin, cout)
        w_taps = jnp.pad(w_taps, ((0, 0), (0, 0), (0, cout_p - cout))).astype(jnp.bfloat16)

        def conv_stats_kernel(x_ref, w_ref, mask_ref, y_ref, stats_ref, acc_ref):
            r = pl.program_id(1)
            base = s * r * rt
            acc_ref[...] = jnp.zeros_like(acc_ref)
            for t in range(kh * kw):
                i, j = divmod(t, kw)
                start = base + i * wp + j
                if s == 1:
                    lhs = x_ref[0, pl.ds(start, rt), :]
                else:
                    # TODO(synk): move stride>1 row subsampling into the prologue here too;
                    # sublane-strided VMEM reads are a perf/lowering risk on some generations.
                    lhs = x_ref[0, pl.ds(start, rt, stride=s), :]
                acc_ref[...] += jnp.dot(lhs, w_ref[t], preferred_element_type=jnp.float32)
            acc = acc_ref[...]
            y_ref[0] = acc.astype(jnp.bfloat16)
            _emit_stats(stats_ref, acc, mask_ref[...])

        first_in = x_flat
        first_spec = pl.BlockSpec((1, f_rows, cin), lambda b, r, c: (b, 0, 0))
        w_in = w_taps
        w_spec = pl.BlockSpec((kh * kw, cin, ct), lambda b, r, c: (0, 0, c))
        scratch = [pltpu.VMEM((rt, ct), jnp.float32)]

    y, pstats = pl.pallas_call(
        conv_stats_kernel,
        grid=(n, nrt, nct),
        in_specs=[
            first_spec,
            w_spec,
            pl.BlockSpec((rt, 1), lambda b, r, c: (r, 0)),
        ],
        out_specs=(
            pl.BlockSpec((1, rt, ct), lambda b, r, c: (b, r, c)),
            pl.BlockSpec((1, 1, 2, ct), lambda b, r, c: (b, r, 0, c)),
        ),
        out_shape=(
            jax.ShapeDtypeStruct((n, lf_pad, cout_p), jnp.bfloat16),   # bf16 intermediate
            jax.ShapeDtypeStruct((n, nrt, 2, cout_p), jnp.float32),
        ),
        scratch_shapes=scratch,
        compiler_params=cp3,
    )(first_in, w_in, row_mask)

    # ---- tiny cross-tile stats reduction + folded BN scale/shift, once, in XLA ----
    stats = jnp.sum(pstats, axis=(0, 1))                  # [2, Cout_p]
    mean = stats[0] * inv_m
    var = stats[1] * inv_m - mean * mean
    gamma_p = jnp.pad(bn_gamma.astype(jnp.float32), (0, cout_p - cout))
    beta_p = jnp.pad(bn_beta.astype(jnp.float32), (0, cout_p - cout))
    scale = gamma_p * jax.lax.rsqrt(var + BN_EPS)
    shift = beta_p - mean * scale
    ss = jnp.stack([scale, shift], axis=0)                # [2, Cout_p]

    # ================= pass 2: folded BN affine + LeakyReLU (+ channel crop) =================
    def bn_act_kernel(ss_ref, y_ref, o_ref):
        yv = y_ref[0].astype(jnp.float32) * ss_ref[0:1, :] + ss_ref[1:2, :]
        act = jnp.where(yv > 0, yv, LEAKY_SLOPE * yv)
        o_ref[0] = act[:, :cout]                          # drop channel padding in-kernel

    out_flat = pl.pallas_call(
        bn_act_kernel,
        grid=(n, nrt),
        in_specs=[
            pl.BlockSpec((2, cout_p), lambda b, r: (0, 0)),
            pl.BlockSpec((1, rt, cout_p), lambda b, r: (b, r, 0)),
        ],
        out_specs=pl.BlockSpec((1, rt, cout), lambda b, r: (b, r, 0)),
        out_shape=jax.ShapeDtypeStruct((n, lf_pad, cout), jnp.float32),
        compiler_params=cp2,
    )(ss, y)

    # drop wrap columns / row padding, back to NCHW (XLA fuses slice + transpose; it only
    # touches the exact-size [N, OH, OW, Cout] data, not the lane-padded width).
    out = out_flat[:, :lf, :].reshape(n, oh, wp, cout)[:, :, :ow, :]
    return jnp.transpose(out, (0, 3, 1, 2))


def _reference(x, wgt, gamma, beta, stride, padding):
    """Pure-JAX reference matching the PyTorch module's training-mode forward."""
    conv = jax.lax.conv_general_dilated(
        x, wgt, window_strides=(stride, stride),
        padding=((padding, padding), (padding, padding)),
        dimension_numbers=("NCHW", "OIHW", "NCHW"))
    mean = jnp.mean(conv, axis=(0, 2, 3), keepdims=True)
    var = jnp.mean((conv - mean) ** 2, axis=(0, 2, 3), keepdims=True)
    yb = (conv - mean) * jax.lax.rsqrt(var + BN_EPS)
    yb = yb * gamma.reshape(1, -1, 1, 1) + beta.reshape(1, -1, 1, 1)
    return jnp.where(yb > 0, yb, LEAKY_SLOPE * yb)


if __name__ == "__main__":
    # Module config: ConvBnActBlock(inplanes=4, planes=8, kernel_size=3, stride=1, padding=1)
    inplanes, planes, ksize, stride, padding = 4, 8, 3, 1, 1
    N, H, W = 2, 16, 16

    key = jax.random.PRNGKey(0)
    kx, kw_ = jax.random.split(key)

    x = jax.random.normal(kx, (N, inplanes, H, W), dtype=jnp.float32)
    conv_w = jax.random.normal(kw_, (planes, inplanes, ksize, ksize), dtype=jnp.float32) * 0.1
    bn_gamma = 1.0 + 0.01 * jnp.arange(planes, dtype=jnp.float32)
    bn_beta = 0.02 * jnp.arange(planes, dtype=jnp.float32)

    out = conv_bn_act_block(x, conv_w, bn_gamma, bn_beta, stride, padding)
    out = jax.block_until_ready(out)
    assert out.shape == (N, planes, H, W), out.shape

    ref = _reference(x, conv_w, bn_gamma, bn_beta, stride, padding)
    max_err = float(jnp.max(jnp.abs(out - ref)))
    assert max_err < 5e-2, f"max abs error vs reference: {max_err}"
    print("KERNEL_OK")
</pallas_src>

<mosaic_0001>
module attributes {stable_mosaic.version = 11 : i64} {
  func.func @conv_stats_kernel(%arg0: i32, %arg1: i32, %arg2: i32, %arg3: memref<1x288x36xbf16, #tpu.memory_space<vmem>>, %arg4: memref<36x128xbf16, #tpu.memory_space<vmem>>, %arg5: memref<288x1xf32, #tpu.memory_space<vmem>>, %arg6: memref<1x288x128xbf16, #tpu.memory_space<vmem>>, %arg7: memref<1x1x2x128xf32, #tpu.memory_space<vmem>>) attributes {dimension_semantics = [#tpu.dimension_semantics<parallel>, #tpu.dimension_semantics<parallel>, #tpu.dimension_semantics<parallel>], iteration_bounds = array<i64: 2, 1, 1>, scalar_prefetch = 0 : i64, scratch_operands = 0 : i64, tpu.core_type = #tpu.core_type<tc>, window_params = [{transform_indices = @transform_0, window_bounds = array<i64: 1, 288, 36>}, {transform_indices = @transform_1, window_bounds = array<i64: 36, 128>}, {transform_indices = @transform_2, window_bounds = array<i64: 288, 1>}, {transform_indices = @transform_3, window_bounds = array<i64: 1, 288, 128>}, {transform_indices = @transform_4, window_bounds = array<i64: 1, 1, 2, 128>}]} {
    %c0 = arith.constant 0 : index
    %c0_0 = arith.constant 0 : index
    %c0_1 = arith.constant 0 : index
    %0 = vector.load %arg3[%c0, %c0_0, %c0_1] : memref<1x288x36xbf16, #tpu.memory_space<vmem>>, vector<1x288x36xbf16>
    %1 = vector.shape_cast %0 : vector<1x288x36xbf16> to vector<288x36xbf16>
    %c0_2 = arith.constant 0 : index
    %c0_3 = arith.constant 0 : index
    %2 = vector.load %arg4[%c0_2, %c0_3] : memref<36x128xbf16, #tpu.memory_space<vmem>>, vector<36x128xbf16>
    %cst = arith.constant dense<0.000000e+00> : vector<288x128xf32>
    %3 = tpu.matmul %1, %2, %cst {dimension_numbers = #tpu.dot_dimension_numbers<[1], [0], [0], [1], [0, 0, 1, 1], [], []>} : vector<288x36xbf16>, vector<36x128xbf16>, vector<288x128xf32> -> vector<288x128xf32>
    %4 = arith.truncf %3 : vector<288x128xf32> to vector<288x128xbf16>
    %c0_4 = arith.constant 0 : index
    %c0_5 = arith.constant 0 : index
    %c0_6 = arith.constant 0 : index
    %5 = vector.load %arg6[%c0_4, %c0_5, %c0_6] : memref<1x288x128xbf16, #tpu.memory_space<vmem>>, vector<1x288x128xbf16>
    %6 = vector.shape_cast %5 : vector<1x288x128xbf16> to vector<288x128xbf16>
    %7 = vector.shape_cast %4 : vector<288x128xbf16> to vector<1x288x128xbf16>
    tpu.vector_store %arg6[%c0_4, %c0_5, %c0_6], %7 {strides = array<i32>} : memref<1x288x128xbf16, #tpu.memory_space<vmem>>, vector<1x288x128xbf16>,
    %c0_7 = arith.constant 0 : index
    %c0_8 = arith.constant 0 : index
    %8 = vector.load %arg5[%c0_7, %c0_8] : memref<288x1xf32, #tpu.memory_space<vmem>>, vector<288x1xf32>
    %9 = vector.broadcast %8 : vector<288x1xf32> to vector<288x128xf32>
    %10 = arith.mulf %3, %9 : vector<288x128xf32>
    %cst_9 = arith.constant dense<0.000000e+00> : vector<128xf32>
    %11 = vector.multi_reduction <add>, %10, %cst_9 [0] : vector<288x128xf32> to vector<128xf32>
    %12 = vector.shape_cast %11 : vector<128xf32> to vector<1x128xf32>
    %c0_10 = arith.constant 0 : index
    %c0_11 = arith.constant 0 : index
    %c0_12 = arith.constant 0 : index
    %c0_13 = arith.constant 0 : index
    %13 = vector.load %arg7[%c0_10, %c0_11, %c0_12, %c0_13] : memref<1x1x2x128xf32, #tpu.memory_space<vmem>>, vector<1x1x1x128xf32>
    %14 = vector.shape_cast %13 : vector<1x1x1x128xf32> to vector<1x128xf32>
    %15 = vector.shape_cast %12 : vector<1x128xf32> to vector<1x1x1x128xf32>
    tpu.vector_store %arg7[%c0_10, %c0_11, %c0_12, %c0_13], %15 {strides = array<i32>} : memref<1x1x2x128xf32, #tpu.memory_space<vmem>>, vector<1x1x1x128xf32>,
    %16 = arith.mulf %10, %3 : vector<288x128xf32>
    %cst_14 = arith.constant dense<0.000000e+00> : vector<128xf32>
    %17 = vector.multi_reduction <add>, %16, %cst_14 [0] : vector<288x128xf32> to vector<128xf32>
    %18 = vector.shape_cast %17 : vector<128xf32> to vector<1x128xf32>
    %c0_15 = arith.constant 0 : index
    %c0_16 = arith.constant 0 : index
    %c1 = arith.constant 1 : index
    %c0_17 = arith.constant 0 : index
    %19 = vector.load %arg7[%c0_15, %c0_16, %c1, %c0_17] : memref<1x1x2x128xf32, #tpu.memory_space<vmem>>, vector<1x1x1x128xf32>
    %20 = vector.shape_cast %19 : vector<1x1x1x128xf32> to vector<1x128xf32>
    %21 = vector.shape_cast %18 : vector<1x128xf32> to vector<1x1x1x128xf32>
    tpu.vector_store %arg7[%c0_15, %c0_16, %c1, %c0_17], %21 {strides = array<i32>} : memref<1x1x2x128xf32, #tpu.memory_space<vmem>>, vector<1x1x1x128xf32>,
    return
  }
  func.func @transform_0(%arg0: i32, %arg1: i32, %arg2: i32) -> (i32, i32, i32) {
    %c0_i32 = arith.constant 0 : i32
    %c0_i32_0 = arith.constant 0 : i32
    return %arg0, %arg1, %c0_i32 : i32, i32, i32
  }
  func.func @transform_1(%arg0: i32, %arg1: i32, %arg2: i32) -> (i32, i32) {
    %c0_i32 = arith.constant 0 : i32
    %c0_i32_0 = arith.constant 0 : i32
    return %c0_i32, %arg2 : i32, i32
  }
  func.func @transform_2(%arg0: i32, %arg1: i32, %arg2: i32) -> (i32, i32) {
    %c0_i32 = arith.constant 0 : i32
    %c0_i32_0 = arith.constant 0 : i32
    return %arg1, %c0_i32 : i32, i32
  }
  func.func @transform_3(%arg0: i32, %arg1: i32, %arg2: i32) -> (i32, i32, i32) {
    %c0_i32 = arith.constant 0 : i32
    return %arg0, %arg1, %arg2 : i32, i32, i32
  }
  func.func @transform_4(%arg0: i32, %arg1: i32, %arg2: i32) -> (i32, i32, i32, i32) {
    %c0_i32 = arith.constant 0 : i32
    %c0_i32_0 = arith.constant 0 : i32
    return %arg0, %arg1, %c0_i32, %arg2 : i32, i32, i32, i32
  }
}

module attributes {stable_mosaic.version = 11 : i64} {
  func.func @bn_act_kernel(%arg0: i32, %arg1: i32, %arg2: memref<2x128xf32, #tpu.memory_space<vmem>>, %arg3: memref<1x288x128xbf16, #tpu.memory_space<vmem>>, %arg4: memref<1x288x8xf32, #tpu.memory_space<vmem>>) attributes {dimension_semantics = [#tpu.dimension_semantics<parallel>, #tpu.dimension_semantics<parallel>], iteration_bounds = array<i64: 2, 1>, scalar_prefetch = 0 : i64, scratch_operands = 0 : i64, tpu.core_type = #tpu.core_type<tc>, window_params = [{pipeline_mode = #tpu.pipeline_mode<synchronous>, transform_indices = @transform_0, window_bounds = array<i64: 2, 128>}, {transform_indices = @transform_1, window_bounds = array<i64: 1, 288, 128>}, {transform_indices = @transform_2, window_bounds = array<i64: 1, 288, 8>}]} {
    %c0 = arith.constant 0 : index
    %c0_0 = arith.constant 0 : index
    %c0_1 = arith.constant 0 : index
    %0 = vector.load %arg3[%c0, %c0_0, %c0_1] : memref<1x288x128xbf16, #tpu.memory_space<vmem>>, vector<1x288x128xbf16>
    %1 = vector.shape_cast %0 : vector<1x288x128xbf16> to vector<288x128xbf16>
    %2 = arith.extf %1 : vector<288x128xbf16> to vector<288x128xf32>
    %c0_2 = arith.constant 0 : index
    %c0_3 = arith.constant 0 : index
    %3 = vector.load %arg2[%c0_2, %c0_3] : memref<2x128xf32, #tpu.memory_space<vmem>>, vector<1x128xf32>
    %4 = vector.broadcast %3 : vector<1x128xf32> to vector<288x128xf32>
    %5 = arith.mulf %2, %4 : vector<288x128xf32>
    %c1 = arith.constant 1 : index
    %c0_4 = arith.constant 0 : index
    %6 = vector.load %arg2[%c1, %c0_4] : memref<2x128xf32, #tpu.memory_space<vmem>>, vector<1x128xf32>
    %7 = vector.broadcast %6 : vector<1x128xf32> to vector<288x128xf32>
    %8 = arith.addf %5, %7 : vector<288x128xf32>
    %cst = arith.constant 0.000000e+00 : f32
    %9 = vector.broadcast %cst : f32 to vector<288x128xf32>
    %10 = arith.cmpf ogt, %8, %9 : vector<288x128xf32>
    %cst_5 = arith.constant 1.000000e-01 : f32
    %11 = vector.broadcast %cst_5 : f32 to vector<288x128xf32>
    %12 = arith.mulf %11, %8 : vector<288x128xf32>
    %13 = arith.select %10, %8, %12 : vector<288x128xi1>, vector<288x128xf32>
    %14 = vector.extract_strided_slice %13 {offsets = [0, 0], sizes = [288, 8], strides = [1, 1]} : vector<288x128xf32> to vector<288x8xf32>
    %c0_6 = arith.constant 0 : index
    %c0_7 = arith.constant 0 : index
    %c0_8 = arith.constant 0 : index
    %15 = vector.load %arg4[%c0_6, %c0_7, %c0_8] : memref<1x288x8xf32, #tpu.memory_space<vmem>>, vector<1x288x8xf32>
    %16 = vector.shape_cast %15 : vector<1x288x8xf32> to vector<288x8xf32>
    %17 = vector.shape_cast %14 : vector<288x8xf32> to vector<1x288x8xf32>
    tpu.vector_store %arg4[%c0_6, %c0_7, %c0_8], %17 {strides = array<i32>} : memref<1x288x8xf32, #tpu.memory_space<vmem>>, vector<1x288x8xf32>,
    return
  }
  func.func @transform_0(%arg0: i32, %arg1: i32) -> (i32, i32) {
    %c0_i32 = arith.constant 0 : i32
    %c0_i32_0 = arith.constant 0 : i32
    %c0_i32_1 = arith.constant 0 : i32
    return %c0_i32, %c0_i32_0 : i32, i32
  }
  func.func @transform_1(%arg0: i32, %arg1: i32) -> (i32, i32, i32) {
    %c0_i32 = arith.constant 0 : i32
    %c0_i32_0 = arith.constant 0 : i32
    return %arg0, %arg1, %c0_i32 : i32, i32, i32
  }
  func.func @transform_2(%arg0: i32, %arg1: i32) -> (i32, i32, i32) {
    %c0_i32 = arith.constant 0 : i32
    %c0_i32_0 = arith.constant 0 : i32
    return %arg0, %arg1, %c0_i32 : i32, i32, i32
  }
}

</mosaic_0001>

<bundles_post_ra>
// kernel: conv_bn_act_block.3
= control target key start
LH: loop header
LB: loop body
LE: loop exit
PB: predicated region body
PF: predicated region fallthrough
CT: control target
= control target key end

     0   :  { %s734_s9 = smov 0   ;;  %s736_s10 = smov 0   ;;  %s947_s0 = inlined_call_operand.vmem [shape: f32[2,128], index: 0, kind: input, shape index: {}]   ;;  %s948_s1 = inlined_call_operand.vmem [shape: bf16[2,288,128], index: 1, kind: input, shape index: {}]   ;;  %s949_s2 = inlined_call_operand.vmem [shape: f32[2,288,8], index: 2, kind: output, shape index: {}]  }
   0x1   :  { %s738_s11 = smov 0  }
   0x2 LB: > { %s24_s12 = sadd.s32 1, %s713_s10  ;;  %p573_p0 = scmp.ge.s32.totalorder %s717_s11, 1  ;;  %s717_s11 = sphi %s738_s11, %s12_s11   ;;  %s713_s10 = sphi %s736_s10, %s951_s10   ;;  %s709_s9 = sphi %s734_s9, %s950_s9  }
   0x3   : > { %p26_p1 = scmp.ge.s32.totalorder %s24_s12, 2  ;;  %p133_p2 = scmp.lt.s32.totalorder %s717_s11, 3 }
   0x5   : > { %s953_s12 = smov (%p26_p1, %s24_s12), 0  ;;  %p134_p3 = pnand %p573_p0, %p133_p2 }
   0x6   : > { %p164_p4 = scmp.lt.s32.totalorder (!%p134_p3), %s709_s9, 1  ;;  %v763_v0 = vld [vmem:[%s947_s0] ss:$0 sm:$0xff] (!%p134_p3)  ;;  %vm445_vm0 = vcmask (!%p134_p3), 64512   ;;  %v772_v9 = vld [vmem:[%s947_s0 + $0x1] ss:$0 sm:$0xff] (!%p134_p3) }
   0x7   : > { %137 = sbr.rel (%p134_p3) target bundleno = 77 (0x4d), region = 28 }
   0xe   : > { %s955_s9 = smov (!%p164_p4, %s709_s9), 1 }
   0xf   : > { %s669_s13 = smul.u32 144, %s955_s9 }
  0x10   : > { %s670_s21 = smul.u32 288, %s955_s9 }
  0x11   : > { %s758_s16 = scalar_lea.vmem %s948_s1, %s669_s13 }
  0x12   : > { %v581_v1 = vld [vmem:[%s758_s16] sm:$0xff]   ;;  %v652_v2 = vld [vmem:[%s758_s16 + $0x8] sm:$0xff]   ;;  %v653_v3 = vld [vmem:[%s758_s16 + $0x10] sm:$0xff]   ;;  %s794_s24 = scalar_lea.vmem %s949_s2, %s670_s21 }
  0x13   : > { %v582_v4 = vunpack.c.l.bf16 %v581_v1  ;;  %v583_v5 = vunpack.c.h.bf16 %v581_v1  ;;  %v586_v6 = vunpack.c.l.bf16 %v652_v2  ;;  %v587_v7 = vunpack.c.h.bf16 %v652_v2  ;;  %v654_v8 = vld [vmem:[%s758_s16 + $0x18] sm:$0xff]   ;;  %v655_v37 = vld [vmem:[%s758_s16 + $0x20] sm:$0xff]   ;;  %v656_v41 = vld [vmem:[%s758_s16 + $0x28] sm:$0xff]  }
  0x14   : > { %v590_v10 = vunpack.c.l.bf16 %v653_v3  ;;  %v591_v11 = vunpack.c.h.bf16 %v653_v3  ;;  %v594_v12 = vunpack.c.l.bf16 %v654_v8  ;;  %v595_v13 = vunpack.c.h.bf16 %v654_v8  ;;  %v657_v42 = vld [vmem:[%s758_s16 + $0x30] sm:$0xff]   ;;  %v658_v49 = vld [vmem:[%s758_s16 + $0x38] sm:$0xff]  }
  0x15   : > { %v260_v14 = vmul.f32 %v582_v4, %v763_v0  ;;  %v261_v15 = vmul.f32 %v583_v5, %v763_v0  ;;  %v262_v16 = vmul.f32 %v586_v6, %v763_v0  ;;  %v263_v17 = vmul.f32 %v587_v7, %v763_v0  ;;  %v659_v7 = vld [vmem:[%s758_s16 + $0x40] sm:$0xff]  }
  0x16   : > { %v264_v18 = vmul.f32 %v590_v10, %v763_v0  ;;  %v265_v19 = vmul.f32 %v591_v11, %v763_v0  ;;  %v266_v20 = vmul.f32 %v594_v12, %v763_v0  ;;  %v267_v21 = vmul.f32 %v595_v13, %v763_v0 }
  0x17   : > { %v301_v22 = vadd.f32 %v772_v9, %v260_v14  ;;  %v302_v23 = vadd.f32 %v772_v9, %v261_v15  ;;  %v303_v24 = vadd.f32 %v772_v9, %v262_v16  ;;  %v304_v25 = vadd.f32 %v772_v9, %v263_v17 }
  0x18   : > { %v305_v26 = vadd.f32 %v772_v9, %v264_v18  ;;  %v306_v27 = vadd.f32 %v772_v9, %v265_v19  ;;  %v307_v28 = vadd.f32 %v772_v9, %v266_v20  ;;  %v308_v29 = vadd.f32 %v772_v9, %v267_v21  ;;  %v660_v20 = vld [vmem:[%s758_s16 + $0x48] sm:$0xff]  }
  0x19   : > { %vm337_vm1 = vcmp.gt.f32.partialorder %v301_v22, 0.0  ;;  %v373_v30 = vmul.f32 0.1, %v301_v22  ;;  %vm338_vm2 = vcmp.gt.f32.partialorder %v302_v23, 0.0  ;;  %v374_v31 = vmul.f32 0.1, %v302_v23 }
  0x1a   : > { %vm339_vm3 = vcmp.gt.f32.partialorder %v303_v24, 0.0  ;;  %v375_v32 = vmul.f32 0.1, %v303_v24  ;;  %vm340_vm4 = vcmp.gt.f32.partialorder %v304_v25, 0.0  ;;  %v376_v33 = vmul.f32 0.1, %v304_v25 }
  0x1b   : > { %v409_v34 = vsel %vm337_vm1, %v301_v22, %v373_v30  ;;  %v410_v35 = vsel %vm338_vm2, %v302_v23, %v374_v31  ;;  %vm341_vm5 = vcmp.gt.f32.partialorder %v305_v26, 0.0  ;;  %v377_v36 = vmul.f32 0.1, %v305_v26 }
  0x1c   : > { %446 = vst.msk [vmem:[%s794_s24] sm:$0xff] %vm445_vm0, %v409_v34  ;;  %447 = vst.msk [vmem:[%s794_s24 + $0x8] sm:$0xff] %vm445_vm0, %v410_v35  ;;  %v411_v38 = vsel %vm339_vm3, %v303_v24, %v375_v32  ;;  %v412_v39 = vsel %vm340_vm4, %v304_v25, %v376_v33  ;;  %vm342_vm6 = vcmp.gt.f32.partialorder %v306_v27, 0.0  ;;  %v378_v40 = vmul.f32 0.1, %v306_v27  ;;  %v661_v25 = vld [vmem:[%s758_s16 + $0x50] sm:$0xff]  }
  0x1d   : > { %448 = vst.msk [vmem:[%s794_s24 + $0x10] sm:$0xff] %vm445_vm0, %v411_v38  ;;  %449 = vst.msk [vmem:[%s794_s24 + $0x18] sm:$0xff] %vm445_vm0, %v412_v39  ;;  %v413_v43 = vsel %vm341_vm5, %v305_v26, %v377_v36  ;;  %vm343_vm7 = vcmp.gt.f32.partialorder %v307_v28, 0.0  ;;  %v379_v44 = vmul.f32 0.1, %v307_v28  ;;  %vm344_vm8 = vcmp.gt.f32.partialorder %v308_v29, 0.0 }
  0x1e   : > { %450 = vst.msk [vmem:[%s794_s24 + $0x20] sm:$0xff] %vm445_vm0, %v413_v43  ;;  %v414_v45 = vsel %vm342_vm6, %v306_v27, %v378_v40  ;;  %v380_v46 = vmul.f32 0.1, %v308_v29  ;;  %v598_v47 = vunpack.c.l.bf16 %v655_v37  ;;  %v599_v48 = vunpack.c.h.bf16 %v655_v37  ;;  %v662_v43 = vld [vmem:[%s758_s16 + $0x58] sm:$0xff]  }
  0x1f   : > { %451 = vst.msk [vmem:[%s794_s24 + $0x28] sm:$0xff] %vm445_vm0, %v414_v45  ;;  %v415_v50 = vsel %vm343_vm7, %v307_v28, %v379_v44  ;;  %v602_v51 = vunpack.c.l.bf16 %v656_v41  ;;  %v603_v52 = vunpack.c.h.bf16 %v656_v41  ;;  %v606_v53 = vunpack.c.l.bf16 %v657_v42 }
  0x20   : > { %452 = vst.msk [vmem:[%s794_s24 + $0x30] sm:$0xff] %vm445_vm0, %v415_v50  ;;  %v416_v54 = vsel %vm344_vm8, %v308_v29, %v380_v46  ;;  %v268_v55 = vmul.f32 %v598_v47, %v763_v0  ;;  %v269_v56 = vmul.f32 %v599_v48, %v763_v0  ;;  %v607_v57 = vunpack.c.h.bf16 %v657_v42 }
  0x21   : > { %453 = vst.msk [vmem:[%s794_s24 + $0x38] sm:$0xff] %vm445_vm0, %v416_v54  ;;  %v270_v58 = vmul.f32 %v602_v51, %v763_v0  ;;  %v271_v59 = vmul.f32 %v603_v52, %v763_v0  ;;  %v272_v60 = vmul.f32 %v606_v53, %v763_v0  ;;  %v610_v61 = vunpack.c.l.bf16 %v658_v49  ;;  %v663_v54 = vld [vmem:[%s758_s16 + $0x60] sm:$0xff]  }
  0x22   : > { %v309_v62 = vadd.f32 %v772_v9, %v268_v55  ;;  %v310_v63 = vadd.f32 %v772_v9, %v269_v56  ;;  %v273_v1 = vmul.f32 %v607_v57, %v763_v0  ;;  %v611_v2 = vunpack.c.h.bf16 %v658_v49 }
  0x23   : > { %v311_v3 = vadd.f32 %v772_v9, %v270_v58  ;;  %v312_v4 = vadd.f32 %v772_v9, %v271_v59  ;;  %v313_v5 = vadd.f32 %v772_v9, %v272_v60  ;;  %v274_v6 = vmul.f32 %v610_v61, %v763_v0 }
  0x24   : > { %vm345_vm9 = vcmp.gt.f32.partialorder %v309_v62, 0.0  ;;  %v381_v8 = vmul.f32 0.1, %v309_v62  ;;  %vm346_vm10 = vcmp.gt.f32.partialorder %v310_v63, 0.0  ;;  %v382_v10 = vmul.f32 0.1, %v310_v63 }
  0x25   : > { %vm347_vm11 = vcmp.gt.f32.partialorder %v311_v3, 0.0  ;;  %v383_v11 = vmul.f32 0.1, %v311_v3  ;;  %vm348_vm12 = vcmp.gt.f32.partialorder %v312_v4, 0.0  ;;  %v384_v12 = vmul.f32 0.1, %v312_v4 }
  0x26   : > { %v417_v13 = vsel %vm345_vm9, %v309_v62, %v381_v8  ;;  %v418_v14 = vsel %vm346_vm10, %v310_v63, %v382_v10  ;;  %vm349_vm13 = vcmp.gt.f32.partialorder %v313_v5, 0.0  ;;  %v385_v15 = vmul.f32 0.1, %v313_v5 }
  0x27   : > { %454 = vst.msk [vmem:[%s794_s24 + $0x40] sm:$0xff] %vm445_vm0, %v417_v13  ;;  %455 = vst.msk [vmem:[%s794_s24 + $0x48] sm:$0xff] %vm445_vm0, %v418_v14  ;;  %v419_v16 = vsel %vm347_vm11, %v311_v3, %v383_v11  ;;  %v420_v17 = vsel %vm348_vm12, %v312_v4, %v384_v12  ;;  %v314_v18 = vadd.f32 %v772_v9, %v273_v1  ;;  %v614_v23 = vunpack.c.l.bf16 %v659_v7  ;;  %v664_v1 = vld [vmem:[%s758_s16 + $0x68] sm:$0xff]  }
  0x28   : > { %v315_v19 = vadd.f32 %v772_v9, %v274_v6  ;;  %456 = vst.msk [vmem:[%s794_s24 + $0x50] sm:$0xff] %vm445_vm0, %v419_v16  ;;  %457 = vst.msk [vmem:[%s794_s24 + $0x58] sm:$0xff] %vm445_vm0, %v420_v17  ;;  %v421_v21 = vsel %vm349_vm13, %v313_v5, %v385_v15  ;;  %v275_v22 = vmul.f32 %v611_v2, %v763_v0  ;;  %v615_v24 = vunpack.c.h.bf16 %v659_v7  ;;  %v665_v2 = vld [vmem:[%s758_s16 + $0x70] sm:$0xff]  }
  0x29   : > { %458 = vst.msk [vmem:[%s794_s24 + $0x60] sm:$0xff] %vm445_vm0, %v421_v21  ;;  %vm350_vm14 = vcmp.gt.f32.partialorder %v314_v18, 0.0  ;;  %v386_v26 = vmul.f32 0.1, %v314_v18  ;;  %v276_v29 = vmul.f32 %v614_v23, %v763_v0  ;;  %v618_v31 = vunpack.c.l.bf16 %v660_v20  ;;  %v666_v21 = vld [vmem:[%s758_s16 + $0x78] sm:$0xff]  }
  0x2a   : > { %vm351_vm15 = vcmp.gt.f32.partialorder %v315_v19, 0.0  ;;  %v387_v27 = vmul.f32 0.1, %v315_v19  ;;  %v316_v28 = vadd.f32 %v772_v9, %v275_v22  ;;  %v277_v30 = vmul.f32 %v615_v24, %v763_v0 }
  0x2b   : > { %v422_v32 = vsel %vm350_vm14, %v314_v18, %v386_v26  ;;  %v619_v34 = vunpack.c.h.bf16 %v660_v20  ;;  %v622_v35 = vunpack.c.l.bf16 %v661_v25  ;;  %v317_v37 = vadd.f32 %v772_v9, %v276_v29 }
  0x2c   : > { %v423_v33 = vsel %vm351_vm15, %v315_v19, %v387_v27  ;;  %459 = vst.msk [vmem:[%s794_s24 + $0x68] sm:$0xff] %vm445_vm0, %v422_v32  ;;  %vm352_vm1 = vcmp.gt.f32.partialorder %v316_v28, 0.0  ;;  %v388_v36 = vmul.f32 0.1, %v316_v28  ;;  %v318_v38 = vadd.f32 %v772_v9, %v277_v30 }
  0x2d   : > { %460 = vst.msk [vmem:[%s794_s24 + $0x70] sm:$0xff] %vm445_vm0, %v423_v33  ;;  %v278_v39 = vmul.f32 %v618_v31, %v763_v0  ;;  %v279_v40 = vmul.f32 %v619_v34, %v763_v0  ;;  %v280_v41 = vmul.f32 %v622_v35, %v763_v0  ;;  %v623_v42 = vunpack.c.h.bf16 %v661_v25  ;;  %v667_v35 = vld [vmem:[%s758_s16 + $0x80] sm:$0xff]  }
  0x2e   : > { %v424_v44 = vsel %vm352_vm1, %v316_v28, %v388_v36  ;;  %vm353_vm2 = vcmp.gt.f32.partialorder %v317_v37, 0.0  ;;  %v389_v45 = vmul.f32 0.1, %v317_v37  ;;  %vm354_vm3 = vcmp.gt.f32.partialorder %v318_v38, 0.0 }
  0x2f   : > { %461 = vst.msk [vmem:[%s794_s24 + $0x78] sm:$0xff] %vm445_vm0, %v424_v44  ;;  %v390_v46 = vmul.f32 0.1, %v318_v38  ;;  %v319_v47 = vadd.f32 %v772_v9, %v278_v39  ;;  %v320_v48 = vadd.f32 %v772_v9, %v279_v40  ;;  %v321_v49 = vadd.f32 %v772_v9, %v280_v41 }
  0x30   : > { %v425_v50 = vsel %vm353_vm2, %v317_v37, %v389_v45  ;;  %v281_v51 = vmul.f32 %v623_v42, %v763_v0  ;;  %v626_v52 = vunpack.c.l.bf16 %v662_v43  ;;  %v627_v53 = vunpack.c.h.bf16 %v662_v43  ;;  %v668_v42 = vld [vmem:[%s758_s16 + $0x88] sm:$0xff]  }
  0x31   : > { %462 = vst.msk [vmem:[%s794_s24 + $0x80] sm:$0xff] %vm445_vm0, %v425_v50  ;;  %v426_v55 = vsel %vm354_vm3, %v318_v38, %v390_v46  ;;  %vm355_vm4 = vcmp.gt.f32.partialorder %v319_v47, 0.0  ;;  %v391_v56 = vmul.f32 0.1, %v319_v47  ;;  %vm356_vm5 = vcmp.gt.f32.partialorder %v320_v48, 0.0 }
  0x32   : > { %463 = vst.msk [vmem:[%s794_s24 + $0x88] sm:$0xff] %vm445_vm0, %v426_v55  ;;  %v392_v57 = vmul.f32 0.1, %v320_v48  ;;  %vm357_vm6 = vcmp.gt.f32.partialorder %v321_v49, 0.0  ;;  %v393_v58 = vmul.f32 0.1, %v321_v49  ;;  %v322_v59 = vadd.f32 %v772_v9, %v281_v51 }
  0x33   : > { %v427_v60 = vsel %vm355_vm4, %v319_v47, %v391_v56  ;;  %v282_v61 = vmul.f32 %v626_v52, %v763_v0  ;;  %v283_v62 = vmul.f32 %v627_v53, %v763_v0  ;;  %v630_v63 = vunpack.c.l.bf16 %v663_v54 }
  0x34   : > { %464 = vst.msk [vmem:[%s794_s24 + $0x90] sm:$0xff] %vm445_vm0, %v427_v60  ;;  %v428_v3 = vsel %vm356_vm5, %v320_v48, %v392_v57  ;;  %v429_v4 = vsel %vm357_vm6, %v321_v49, %v393_v58  ;;  %vm358_vm7 = vcmp.gt.f32.partialorder %v322_v59, 0.0  ;;  %v394_v5 = vmul.f32 0.1, %v322_v59 }
  0x35   : > { %465 = vst.msk [vmem:[%s794_s24 + $0x98] sm:$0xff] %vm445_vm0, %v428_v3  ;;  %466 = vst.msk [vmem:[%s794_s24 + $0xa0] sm:$0xff] %vm445_vm0, %v429_v4  ;;  %v323_v6 = vadd.f32 %v772_v9, %v282_v61  ;;  %v324_v7 = vadd.f32 %v772_v9, %v283_v62  ;;  %v284_v8 = vmul.f32 %v630_v63, %v763_v0  ;;  %v631_v10 = vunpack.c.h.bf16 %v663_v54 }
  0x36   : > { %v430_v11 = vsel %vm358_vm7, %v322_v59, %v394_v5  ;;  %v634_v12 = vunpack.c.l.bf16 %v664_v1  ;;  %v635_v13 = vunpack.c.h.bf16 %v664_v1  ;;  %v638_v14 = vunpack.c.l.bf16 %v665_v2 }
  0x37   : > { %467 = vst.msk [vmem:[%s794_s24 + $0xa8] sm:$0xff] %vm445_vm0, %v430_v11  ;;  %vm359_vm8 = vcmp.gt.f32.partialorder %v323_v6, 0.0  ;;  %v395_v15 = vmul.f32 0.1, %v323_v6  ;;  %vm360_vm9 = vcmp.gt.f32.partialorder %v324_v7, 0.0  ;;  %v325_v17 = vadd.f32 %v772_v9, %v284_v8 }
  0x38   : > { %v396_v16 = vmul.f32 0.1, %v324_v7  ;;  %v285_v18 = vmul.f32 %v631_v10, %v763_v0  ;;  %v286_v19 = vmul.f32 %v634_v12, %v763_v0  ;;  %v287_v20 = vmul.f32 %v635_v13, %v763_v0 }
  0x39   : > { %v431_v22 = vsel %vm359_vm8, %v323_v6, %v395_v15  ;;  %v288_v24 = vmul.f32 %v638_v14, %v763_v0  ;;  %v639_v25 = vunpack.c.h.bf16 %v665_v2  ;;  %vm361_vm10 = vcmp.gt.f32.partialorder %v325_v17, 0.0 }
  0x3a   : > { %v432_v23 = vsel %vm360_vm9, %v324_v7, %v396_v16  ;;  %468 = vst.msk [vmem:[%s794_s24 + $0xb0] sm:$0xff] %vm445_vm0, %v431_v22  ;;  %v397_v26 = vmul.f32 0.1, %v325_v17  ;;  %v326_v27 = vadd.f32 %v772_v9, %v285_v18  ;;  %v327_v28 = vadd.f32 %v772_v9, %v286_v19 }
  0x3b   : > { %469 = vst.msk [vmem:[%s794_s24 + $0xb8] sm:$0xff] %vm445_vm0, %v432_v23  ;;  %v328_v29 = vadd.f32 %v772_v9, %v287_v20  ;;  %v329_v30 = vadd.f32 %v772_v9, %v288_v24  ;;  %v289_v31 = vmul.f32 %v639_v25, %v763_v0  ;;  %v642_v32 = vunpack.c.l.bf16 %v666_v21 }
  0x3c   : > { %v433_v33 = vsel %vm361_vm10, %v325_v17, %v397_v26  ;;  %vm362_vm11 = vcmp.gt.f32.partialorder %v326_v27, 0.0  ;;  %v398_v34 = vmul.f32 0.1, %v326_v27  ;;  %vm363_vm12 = vcmp.gt.f32.partialorder %v327_v28, 0.0 }
  0x3d   : > { %470 = vst.msk [vmem:[%s794_s24 + $0xc0] sm:$0xff] %vm445_vm0, %v433_v33  ;;  %v399_v36 = vmul.f32 0.1, %v327_v28  ;;  %vm364_vm13 = vcmp.gt.f32.partialorder %v328_v29, 0.0  ;;  %v400_v37 = vmul.f32 0.1, %v328_v29  ;;  %v330_v40 = vadd.f32 %v772_v9, %v289_v31 }
  0x3e   : > { %vm365_vm14 = vcmp.gt.f32.partialorder %v329_v30, 0.0  ;;  %v434_v38 = vsel %vm362_vm11, %v326_v27, %v398_v34  ;;  %v401_v39 = vmul.f32 0.1, %v329_v30  ;;  %v290_v41 = vmul.f32 %v642_v32, %v763_v0 }
  0x3f   : > { %471 = vst.msk [vmem:[%s794_s24 + $0xc8] sm:$0xff] %vm445_vm0, %v434_v38  ;;  %v435_v43 = vsel %vm363_vm12, %v327_v28, %v399_v36  ;;  %v436_v44 = vsel %vm364_vm13, %v328_v29, %v400_v37  ;;  %v643_v45 = vunpack.c.h.bf16 %v666_v21  ;;  %v646_v46 = vunpack.c.l.bf16 %v667_v35 }
  0x40   : > { %472 = vst.msk [vmem:[%s794_s24 + $0xd0] sm:$0xff] %vm445_vm0, %v435_v43  ;;  %473 = vst.msk [vmem:[%s794_s24 + $0xd8] sm:$0xff] %vm445_vm0, %v436_v44  ;;  %v437_v47 = vsel %vm365_vm14, %v329_v30, %v401_v39  ;;  %vm366_vm15 = vcmp.gt.f32.partialorder %v330_v40, 0.0  ;;  %v402_v48 = vmul.f32 0.1, %v330_v40  ;;  %v331_v49 = vadd.f32 %v772_v9, %v290_v41 }
  0x41   : > { %474 = vst.msk [vmem:[%s794_s24 + $0xe0] sm:$0xff] %vm445_vm0, %v437_v47  ;;  %v291_v50 = vmul.f32 %v643_v45, %v763_v0  ;;  %v292_v51 = vmul.f32 %v646_v46, %v763_v0  ;;  %v647_v52 = vunpack.c.h.bf16 %v667_v35  ;;  %v650_v53 = vunpack.c.l.bf16 %v668_v42 }
  0x42   : > { %v438_v54 = vsel %vm366_vm15, %v330_v40, %v402_v48  ;;  %vm367_vm1 = vcmp.gt.f32.partialorder %v331_v49, 0.0  ;;  %v403_v55 = vmul.f32 0.1, %v331_v49  ;;  %v651_v56 = vunpack.c.h.bf16 %v668_v42 }
  0x43   : > { %475 = vst.msk [vmem:[%s794_s24 + $0xe8] sm:$0xff] %vm445_vm0, %v438_v54  ;;  %v332_v57 = vadd.f32 %v772_v9, %v291_v50  ;;  %v333_v58 = vadd.f32 %v772_v9, %v292_v51  ;;  %v293_v59 = vmul.f32 %v647_v52, %v763_v0  ;;  %v294_v60 = vmul.f32 %v650_v53, %v763_v0 }
  0x44   : > { %v439_v61 = vsel %vm367_vm1, %v331_v49, %v403_v55  ;;  %v295_v62 = vmul.f32 %v651_v56, %v763_v0 }
  0x45   : > { %476 = vst.msk [vmem:[%s794_s24 + $0xf0] sm:$0xff] %vm445_vm0, %v439_v61  ;;  %vm368_vm2 = vcmp.gt.f32.partialorder %v332_v57, 0.0  ;;  %v404_v63 = vmul.f32 0.1, %v332_v57  ;;  %vm369_vm3 = vcmp.gt.f32.partialorder %v333_v58, 0.0  ;;  %v334_v2 = vadd.f32 %v772_v9, %v293_v59 }
  0x46   : > { %v405_v1 = vmul.f32 0.1, %v333_v58  ;;  %v335_v3 = vadd.f32 %v772_v9, %v294_v60  ;;  %v336_v4 = vadd.f32 %v772_v9, %v295_v62 }
  0x47   : > { %v440_v5 = vsel %vm368_vm2, %v332_v57, %v404_v63  ;;  %vm370_vm4 = vcmp.gt.f32.partialorder %v334_v2, 0.0  ;;  %v406_v0 = vmul.f32 0.1, %v334_v2 }
  0x48   : > { %v441_v6 = vsel %vm369_vm3, %v333_v58, %v405_v1  ;;  %477 = vst.msk [vmem:[%s794_s24 + $0xf8] sm:$0xff] %vm445_vm0, %v440_v5  ;;  %vm371_vm5 = vcmp.gt.f32.partialorder %v335_v3, 0.0  ;;  %v407_v7 = vmul.f32 0.1, %v335_v3  ;;  %vm372_vm6 = vcmp.gt.f32.partialorder %v336_v4, 0.0 }
  0x49   : > { %478 = vst.msk [vmem:[%s794_s24 + $0x100] sm:$0xff] %vm445_vm0, %v441_v6  ;;  %v408_v8 = vmul.f32 0.1, %v336_v4  ;;  %v442_v10 = vsel %vm370_vm4, %v334_v2, %v406_v0 }
  0x4a   : > { %v443_v11 = vsel %vm371_vm5, %v335_v3, %v407_v7  ;;  %479 = vst.msk [vmem:[%s794_s24 + $0x108] sm:$0xff] %vm445_vm0, %v442_v10 }
  0x4b   : > { %480 = vst.msk [vmem:[%s794_s24 + $0x110] sm:$0xff] %vm445_vm0, %v443_v11  ;;  %v444_v9 = vsel %vm372_vm6, %v336_v4, %v408_v8 }
  0x4c   : > { %481 = vst.msk [vmem:[%s794_s24 + $0x118] sm:$0xff] %vm445_vm0, %v444_v9 }
  0x4d PF: > { %s12_s11 = sadd.s32 1, %s717_s11   ;;  %s950_s9 = smov %s713_s10 }
  0x4e   : > { %p9_p5 = scmp.ge.s32.totalorder %s12_s11, 4   ;;  %s951_s10 = smov %s953_s12 }
  0x50   :  { %11 = sbr.rel (!%p9_p5) target bundleno = 2 (0x2), region = 58 }

// kernel: conv_bn_act_block.2
= control target key start
LH: loop header
LB: loop body
LE: loop exit
PB: predicated region body
PF: predicated region fallthrough
CT: control target
= control target key end

     0   :  { %s1834_s15 = smov 0   ;;  %s1836_s16 = smov 0   ;;  %s2175_s0 = inlined_call_operand.vmem [shape: bf16[2,288,36], index: 0, kind: input, shape index: {}]   ;;  %s2176_s1 = inlined_call_operand.vmem [shape: bf16[36,128], index: 1, kind: input, shape index: {}]   ;;  %s2177_s2 = inlined_call_operand.vmem [shape: f32[288,1], index: 2, kind: input, shape index: {}]   ;;  %s2178_s3 = inlined_call_operand.vmem [shape: bf16[2,288,128], index: 3, kind: output, shape index: {0}]   ;;  %s2179_s4 = inlined_call_operand.vmem [shape: f32[2,1,2,128], index: 4, kind: output, shape index: {1}]  }
   0x1   :  { %s1838_s17 = smov 0  }
   0x2 LB: > { %s34_s18 = sadd.s32 1, %s1802_s16  ;;  %p1440_p0 = scmp.ge.s32.totalorder %s1806_s17, 1  ;;  %s1806_s17 = sphi %s1838_s17, %s15_s17   ;;  %s1802_s16 = sphi %s1836_s16, %s2181_s16   ;;  %s1798_s15 = sphi %s1834_s15, %s2180_s15  }
   0x3   : > { %p36_p1 = scmp.ge.s32.totalorder %s34_s18, 2  ;;  %p219_p2 = scmp.lt.s32.totalorder %s1806_s17, 3 }
   0x5   : > { %s2183_s18 = smov (%p36_p1, %s34_s18), 0  ;;  %p220_p3 = pnand %p1440_p0, %p219_p2 }
   0x6   : > { %v1763_v0 = vld [vmem:[%s2176_s1] sm:$0xff] (!%p220_p3)   ;;  %v1764_v1 = vld [vmem:[%s2176_s1 + $0x8] sm:$0xff] (!%p220_p3)   ;;  %p276_p4 = scmp.lt.s32.totalorder (!%p220_p3), %s1798_s15, 1  ;;  %v883_v3 = vld [vmem:[%s2177_s2 + $0x10] sm:$0xff] (!%p220_p3)  ;;  %vm520_vm0 = vcmask (!%p220_p3), 1041408   ;;  %v1808_v5 = vmov (!%p220_p3), 0  }
   0x7   : > { %223 = sbr.rel (%p220_p3) target bundleno = 323 (0x143), region = 32  ;;  %1685 = vmatprep.subr.bf16.mxu0 (!%p220_p3), %v1763_v0  ;;  %1727 = vmatprep.subr.bf16.mxu1 (!%p220_p3), %v1763_v0  ;;  %v881_v2 = vld [vmem:[%s2177_s2] sm:$0xff] (!%p220_p3)  ;;  %v1765_v4 = vld [vmem:[%s2176_s1 + $0x10] ss:$0 sps:$4 sm:$0x33] (!%p220_p3)   ;;  %vm465_vm1 = vcmask (!%p220_p3), 293888  }
   0x8   : > { %1686 = vmatpush3.bf16.msra.mxu0 (!%p220_p3), %v1763_v0  ;;  %1730 = vmatpush3.bf16.msra.mxu1 (!%p220_p3), %v1763_v0  ;;  %v882_v6 = vld [vmem:[%s2177_s2 + $0x8] sm:$0xff] (!%p220_p3)  ;;  %v884_v7 = vld [vmem:[%s2177_s2 + $0x18] sm:$0xff] (!%p220_p3)  ;;  %v522_v8 = vsel (!%p220_p3), %vm520_vm0, %v1765_v4, 0  ;;  %v885_v13 = vld [vmem:[%s2177_s2 + $0x20] sm:$0xff] (!%p220_p3) }
   0x9   : > { %1687 = vmatprep.subr.bf16.mxu0 (!%p220_p3), %v1764_v1  ;;  %1728 = vmatprep.subr.bf16.mxu1 (!%p220_p3), %v1764_v1  ;;  %v886_v14 = vld [vmem:[%s2177_s2 + $0x28] sm:$0xff] (!%p220_p3)  ;;  %v887_v17 = vld [vmem:[%s2177_s2 + $0x30] sm:$0xff] (!%p220_p3)  ;;  %v888_v18 = vld [vmem:[%s2177_s2 + $0x38] sm:$0xff] (!%p220_p3) }
   0xa   : > { %1761 = vset.pattern.permute.xlu0 (!%p220_p3), %v1808_v5  ;;  %1762 = vset.pattern.permute.xlu1 (!%p220_p3), %v1808_v5  ;;  %v889_v23 = vld [vmem:[%s2177_s2 + $0x40] sm:$0xff] (!%p220_p3)  ;;  %v890_v24 = vld [vmem:[%s2177_s2 + $0x48] sm:$0xff] (!%p220_p3)  ;;  %v891_v25 = vld [vmem:[%s2177_s2 + $0x50] sm:$0xff] (!%p220_p3) }
   0xb   : > { %919 = vperm.xlu0 (!%p220_p3), %1761, %v881_v2   ;;  %929 = vperm.xlu1 (!%p220_p3), %1762, %v883_v3   ;;  %v892_v26 = vld [vmem:[%s2177_s2 + $0x58] sm:$0xff] (!%p220_p3)  ;;  %v893_v31 = vld [vmem:[%s2177_s2 + $0x60] sm:$0xff] (!%p220_p3)  ;;  %v894_v32 = vld [vmem:[%s2177_s2 + $0x68] sm:$0xff] (!%p220_p3) }
   0xc   : > { %1688 = vmatpush3.bf16.msra.mxu0 (!%p220_p3), %v1764_v1  ;;  %1731 = vmatpush3.bf16.msra.mxu1 (!%p220_p3), %v1764_v1  ;;  %v895_v33 = vld [vmem:[%s2177_s2 + $0x70] sm:$0xff] (!%p220_p3)  ;;  %v896_v34 = vld [vmem:[%s2177_s2 + $0x78] sm:$0xff] (!%p220_p3)  ;;  %v897_v38 = vld [vmem:[%s2177_s2 + $0x80] sm:$0xff] (!%p220_p3) }
   0xd   : > { %1733 = vmatprep.subr.msk.bf16.mxu0 (!%p220_p3), %vm520_vm0, %v1765_v4  ;;  %1734 = vmatprep.subr.msk.bf16.mxu1 (!%p220_p3), %vm520_vm0, %v1765_v4  ;;  %v898_v39 = vld [vmem:[%s2177_s2 + $0x88] sm:$0xff] (!%p220_p3)  ;;  %v899_v40 = vld [vmem:[%s2177_s2 + $0x90] sm:$0xff] (!%p220_p3)  ;;  %v900_v41 = vld [vmem:[%s2177_s2 + $0x98] sm:$0xff] (!%p220_p3) }
   0xe   : > { %s2185_s15 = smov (!%p276_p4, %s1798_s15), 1  ;;  %v901_v43 = vld [vmem:[%s2177_s2 + $0xa0] sm:$0xff]  ;;  %v902_v44 = vld [vmem:[%s2177_s2 + $0xa8] sm:$0xff]  ;;  %v903_v45 = vld [vmem:[%s2177_s2 + $0xb0] sm:$0xff] }
   0xf   : > { %s1735_s29 = smul.u32 144, %s2185_s15  ;;  %924 = vperm.xlu0 %1761, %v882_v6   ;;  %934 = vperm.xlu1 %1762, %v884_v7   ;;  %v904_v46 = vld [vmem:[%s2177_s2 + $0xb8] sm:$0xff]  ;;  %v905_v47 = vld [vmem:[%s2177_s2 + $0xc0] sm:$0xff]  ;;  %v906_v48 = vld [vmem:[%s2177_s2 + $0xc8] sm:$0xff] }
  0x10   : > { %1690 = vmatpush3.bf16.msra.mxu0 %v522_v8  ;;  %1732 = vmatpush3.bf16.msra.mxu1 %v522_v8  ;;  %v907_v49 = vld [vmem:[%s2177_s2 + $0xd0] sm:$0xff]  ;;  %v908_v50 = vld [vmem:[%s2177_s2 + $0xd8] sm:$0xff]  ;;  %v909_v51 = vld [vmem:[%s2177_s2 + $0xe0] sm:$0xff] }
  0x11   : > { %s1875_s6 = scalar_lea.vmem %s2175_s0, %s1735_s29  ;;  %v910_v52 = vld [vmem:[%s2177_s2 + $0xe8] sm:$0xff]  ;;  %v911_v53 = vld [vmem:[%s2177_s2 + $0xf0] sm:$0xff]  ;;  %v912_v54 = vld [vmem:[%s2177_s2 + $0xf8] sm:$0xff]  ;;  %s2040_s19 = scalar_lea.vmem %s2178_s3, %s1735_s29 }
  0x12   : > { %v1766_v9 = vld [vmem:[%s1875_s6] sm:$0xff]   ;;  %v1767_v10 = vld [vmem:[%s1875_s6 + $0x50] sm:$0xff]   ;;  %v1768_v11 = vld [vmem:[%s1875_s6 + $0x8] sm:$0xff]   ;;  %s1443_s29 = sshll.u32 %s2185_s15, 1 }
  0x13   : > { %1691 = vmatprep.mubr.msk.bf16.mxu0 %vm465_vm1, %v1766_v9  ;;  %v1769_v12 = vld [vmem:[%s1875_s6 + $0x58] sm:$0xff]   ;;  %1711 = vmatprep.mubr.msk.bf16.mxu1 %vm465_vm1, %v1767_v10  ;;  %v1770_v15 = vld [vmem:[%s1875_s6 + $0x10] sm:$0xff]   ;;  %v1771_v16 = vld [vmem:[%s1875_s6 + $0x60] sm:$0xff]   ;;  %s317_s22 = scalar_lea.vmem %s2179_s4, %s1443_s29 }
  0x14   : > { %1692 = vmatmul.mubr.msk.bf16.vlgmr.msra.gmra.mrb[0].mxu0 %vm465_vm1, %v1768_v11  ;;  %1712 = vmatmul.mubr.msk.bf16.vlgmr.msra.gmra.mrb[0].mxu1 %vm465_vm1, %v1769_v12  ;;  %v1772_v19 = vld [vmem:[%s1875_s6 + $0x18] sm:$0xff]   ;;  %v1773_v20 = vld [vmem:[%s1875_s6 + $0x68] sm:$0xff]   ;;  %v1774_v21 = vld [vmem:[%s1875_s6 + $0x20] sm:$0xff]  }
  0x15   : > { %1695 = vmatprep.mubr.msk.bf16.mxu0 %vm465_vm1, %v1770_v15  ;;  %1715 = vmatprep.mubr.msk.bf16.mxu1 %vm465_vm1, %v1771_v16  ;;  %v1775_v22 = vld [vmem:[%s1875_s6 + $0x70] sm:$0xff]   ;;  %v1776_v27 = vld [vmem:[%s1875_s6 + $0x28] sm:$0xff]   ;;  %v1777_v28 = vld [vmem:[%s1875_s6 + $0x78] sm:$0xff]  }
  0x16   : > { %939 = vperm.xlu0 %1761, %v885_v13   ;;  %944 = vperm.xlu1 %1762, %v886_v14   ;;  %v1778_v29 = vld [vmem:[%s1875_s6 + $0x30] sm:$0xff]   ;;  %v1779_v30 = vld [vmem:[%s1875_s6 + $0x80] sm:$0xff]   ;;  %v1780_v35 = vld [vmem:[%s1875_s6 + $0x38] sm:$0xff]  }
  0x17   : > { %v1781_v36 = vld [vmem:[%s1875_s6 + $0x88] sm:$0xff]   ;;  %v1782_v37 = vld [vmem:[%s1875_s6 + $0x40] sm:$0xff]   ;;  %v915_v57 = vld [vmem:[%s2177_s2 + $0x110] sm:$0xff] }
  0x18   : > { %v1783_v42 = vld [vmem:[%s1875_s6 + $0x48] sm:$0xff]   ;;  %v913_v55 = vld [vmem:[%s2177_s2 + $0x100] sm:$0xff]  ;;  %v916_v58 = vld [vmem:[%s2177_s2 + $0x118] sm:$0xff] }
  0x19   : > { %v914_v56 = vld [vmem:[%s2177_s2 + $0x108] sm:$0xff] }
  0x1a   : > { %949 = vperm.xlu0 %1761, %v887_v17   ;;  %954 = vperm.xlu1 %1762, %v888_v18  }
  0x1c   : > { %1696 = vmatmul.mubr.msk.bf16.gmra.mrb[4].mxu0 %vm465_vm1, %v1772_v19  ;;  %1716 = vmatmul.mubr.msk.bf16.gmra.mrb[4].mxu1 %vm465_vm1, %v1773_v20 }
  0x1d   : > { %1699 = vmatprep.mubr.msk.bf16.mxu0 %vm465_vm1, %v1774_v21  ;;  %1719 = vmatprep.mubr.msk.bf16.mxu1 %vm465_vm1, %v1775_v22 }
  0x1e   : > { %959 = vperm.xlu0 %1761, %v889_v23   ;;  %964 = vperm.xlu1 %1762, %v890_v24  }
  0x22   : > { %969 = vperm.xlu0 %1761, %v891_v25   ;;  %974 = vperm.xlu1 %1762, %v892_v26  }
  0x24   : > { %1700 = vmatmul.mubr.msk.bf16.gmra.mrb[8].mxu0 %vm465_vm1, %v1776_v27  ;;  %1720 = vmatmul.mubr.msk.bf16.gmra.mrb[8].mxu1 %vm465_vm1, %v1777_v28 }
  0x25   : > { %1703 = vmatprep.mubr.msk.bf16.mxu0 %vm465_vm1, %v1778_v29  ;;  %1723 = vmatprep.mubr.msk.bf16.mxu1 %vm465_vm1, %v1779_v30 }
  0x26   : > { %979 = vperm.xlu0 %1761, %v893_v31   ;;  %984 = vperm.xlu1 %1762, %v894_v32  }
  0x2a   : > { %989 = vperm.xlu0 %1761, %v895_v33   ;;  %994 = vperm.xlu1 %1762, %v896_v34  }
  0x2c   : > { %1704 = vmatmul.mubr.msk.bf16.gmra.mrb[12].mxu0 %vm465_vm1, %v1780_v35  ;;  %1724 = vmatmul.mubr.msk.bf16.gmra.mrb[12].mxu1 %vm465_vm1, %v1781_v36 }
  0x2d   : > { %1707 = vmatprep.mubr.msk.bf16.mxu0 %vm465_vm1, %v1782_v37 }
  0x2e   : > { %999 = vperm.xlu0 %1761, %v897_v38   ;;  %1004 = vperm.xlu1 %1762, %v898_v39  }
  0x32   : > { %1009 = vperm.xlu0 %1761, %v899_v40   ;;  %1014 = vperm.xlu1 %1762, %v900_v41  }
  0x34   : > { %1708 = vmatmul.mubr.msk.bf16.gmra.mrb[16].mxu0 %vm465_vm1, %v1783_v42 }
  0x36   : > { %1019 = vperm.xlu0 %1761, %v901_v43   ;;  %1024 = vperm.xlu1 %1762, %v902_v44  }
  0x3a   : > { %1029 = vperm.xlu0 %1761, %v903_v45   ;;  %1034 = vperm.xlu1 %1762, %v904_v46  }
  0x3e   : > { %1039 = vperm.xlu0 %1761, %v905_v47   ;;  %1044 = vperm.xlu1 %1762, %v906_v48  }
  0x42   : > { %1049 = vperm.xlu0 %1761, %v907_v49   ;;  %1054 = vperm.xlu1 %1762, %v908_v50  }
  0x46   : > { %1059 = vperm.xlu0 %1761, %v909_v51   ;;  %1064 = vperm.xlu1 %1762, %v910_v52  }
  0x4a   : > { %1069 = vperm.xlu0 %1761, %v911_v53   ;;  %1074 = vperm.xlu1 %1762, %v912_v54  }
  0x4e   : > { %1079 = vperm.xlu0 %1761, %v913_v55   ;;  %1084 = vperm.xlu1 %1762, %v914_v56  }
  0x52   : > { %1089 = vperm.xlu0 %1761, %v915_v57   ;;  %1094 = vperm.xlu1 %1762, %v916_v58  }
  0x8a   : > { %v920_v59 = vpop.permute.xlu0 %919  ;;  %v930_v60 = vpop.permute.xlu1 %929 }
  0x8e   : > { %v925_v61 = vpop.permute.xlu0 %924  ;;  %v935_v62 = vpop.permute.xlu1 %934 }
  0x95   : > { %v940_v63 = vpop.permute.xlu0 %939  ;;  %v945_v0 = vpop.permute.xlu1 %944 }
  0x99   : > { %v950_v1 = vpop.permute.xlu0 %949  ;;  %v2015_v2 = vpop.permute.xlu1 %954 }
  0x9d   : > { %v2017_v3 = vpop.permute.xlu0 %959  ;;  %v2019_v4 = vpop.permute.xlu1 %964 }
  0xa1   : > { %v2021_v5 = vpop.permute.xlu0 %969  ;;  %v2023_v6 = vpop.permute.xlu1 %974 }
  0xa5   : > { %v2025_v7 = vpop.permute.xlu0 %979  ;;  %v2027_v8 = vpop.permute.xlu1 %984 }
  0xa9   : > { %v2029_v9 = vpop.permute.xlu0 %989  ;;  %v2052_v25 = vpop.permute.xlu1 %994 }
  0xad   : > { %v2054_v26 = vpop.permute.xlu0 %999  ;;  %v2071_v55 = vpop.permute.xlu1 %1004 }
  0xb1   : > { %v2073_v56 = vpop.permute.xlu0 %1009 }
  0xe7   : > { %v1693_v10 = vpop.f32.mrb[0].mxu0  ;;  %v2031_v11 = vpop.f32.mrb[0].mxu1 }
  0xe8   : > { %v558_v12 = vpop.f32.mrb[1].mxu0  ;;  %v2033_v13 = vpop.f32.mrb[1].mxu1  ;;  %v1099_v21 = vmul.f32 %v1693_v10, %v930_v60 }
  0xe9   : > { %v1694_v14 = vpop.f32.mrb[2].mxu0  ;;  %v2042_v15 = vpop.f32.mrb[2].mxu1  ;;  %v1097_v16 = vmul.f32 %v920_v59, %v558_v12 }
  0xea   : > { %v1565_v17 = vpack.c.bf16 %v1694_v14, %v1693_v10  ;;  %v561_v18 = vpop.f32.mrb[3].mxu0  ;;  %v2044_v19 = vpop.f32.mrb[3].mxu1  ;;  %v1615_v20 = vpack.c.bf16 %v2042_v15, %v2031_v11  ;;  %v1100_v28 = vmul.f32 %v1694_v14, %v935_v62  ;;  %v1177_v33 = vmul.f32 %v1693_v10, %v1099_v21 }
  0xeb   : > { %v1560_v22 = vpack.c.bf16 %v561_v18, %v558_v12  ;;  %v1098_v23 = vmul.f32 %v925_v61, %v561_v18  ;;  %v1610_v24 = vpack.c.bf16 %v2044_v19, %v2033_v13  ;;  %v1175_v27 = vmul.f32 %v1097_v16, %v558_v12 }
  0xec   : > { %1647 = vst [vmem:[%s2040_s19 + $0x8] sm:$0xff] %v1565_v17   ;;  %1657 = vst [vmem:[%s2040_s19 + $0x58] sm:$0xff] %v1615_v20   ;;  %v1178_v41 = vmul.f32 %v1694_v14, %v1100_v28 }
  0xed   : > { %1561 = vst [vmem:[%s2040_s19] sm:$0xff] %v1560_v22   ;;  %v1133_v29 = vadd.f32 %v1098_v23, %v1097_v16  ;;  %v1176_v30 = vmul.f32 %v1098_v23, %v561_v18  ;;  %1656 = vst [vmem:[%s2040_s19 + $0x50] sm:$0xff] %v1610_v24  }
  0xef   : > { %v1697_v31 = vpop.f32.mrb[4].mxu0  ;;  %v2058_v32 = vpop.f32.mrb[4].mxu1  ;;  %v1134_v34 = vadd.f32 %v1133_v29, %v1099_v21  ;;  %v1211_v35 = vadd.f32 %v1176_v30, %v1175_v27 }
  0xf0   : > { %v574_v36 = vpop.f32.mrb[5].mxu0  ;;  %v2060_v37 = vpop.f32.mrb[5].mxu1  ;;  %v1103_v51 = vmul.f32 %v1697_v31, %v950_v1 }
  0xf1   : > { %v1101_v38 = vmul.f32 %v940_v63, %v574_v36  ;;  %v1698_v39 = vpop.f32.mrb[6].mxu0  ;;  %v2062_v40 = vpop.f32.mrb[6].mxu1  ;;  %v1212_v42 = vadd.f32 %v1211_v35, %v1177_v33  ;;  %v1135_v43 = vadd.f32 %v1134_v34, %v1100_v28 }
  0xf2   : > { %v577_v44 = vpop.f32.mrb[7].mxu0  ;;  %v2064_v45 = vpop.f32.mrb[7].mxu1  ;;  %v1575_v47 = vpack.c.bf16 %v1698_v39, %v1697_v31  ;;  %v1625_v50 = vpack.c.bf16 %v2062_v40, %v2058_v32  ;;  %v1104_v58 = vmul.f32 %v1698_v39, %v2015_v2  ;;  %v1181_v1 = vmul.f32 %v1697_v31, %v1103_v51 }
  0xf3   : > { %v1179_v46 = vmul.f32 %v1101_v38, %v574_v36  ;;  %v1136_v48 = vadd.f32 %v1135_v43, %v1101_v38  ;;  %v1213_v49 = vadd.f32 %v1212_v42, %v1178_v41  ;;  %v1570_v52 = vpack.c.bf16 %v577_v44, %v574_v36  ;;  %v2095_v34 = vpop.permute.xlu1 %1014  ;;  %v2097_v35 = vpop.permute.xlu0 %1019 }
  0xf4   : > { %1649 = vst [vmem:[%s2040_s19 + $0x18] sm:$0xff] %v1575_v47   ;;  %v1102_v53 = vmul.f32 %v945_v0, %v577_v44  ;;  %v1620_v54 = vpack.c.bf16 %v2064_v45, %v2060_v37  ;;  %1659 = vst [vmem:[%s2040_s19 + $0x68] sm:$0xff] %v1625_v50   ;;  %v1182_v21 = vmul.f32 %v1698_v39, %v1104_v58 }
  0xf5   : > { %v1214_v57 = vadd.f32 %v1213_v49, %v1179_v46  ;;  %1648 = vst [vmem:[%s2040_s19 + $0x10] sm:$0xff] %v1570_v52  }
  0xf6   : > { %v1137_v59 = vadd.f32 %v1136_v48, %v1102_v53  ;;  %v1180_v60 = vmul.f32 %v1102_v53, %v577_v44  ;;  %1658 = vst [vmem:[%s2040_s19 + $0x60] sm:$0xff] %v1620_v54  }
  0xf7   : > { %v1701_v61 = vpop.f32.mrb[8].mxu0  ;;  %v2079_v62 = vpop.f32.mrb[8].mxu1 }
  0xf8   : > { %v590_v63 = vpop.f32.mrb[9].mxu0  ;;  %v2081_v0 = vpop.f32.mrb[9].mxu1  ;;  %v1138_v10 = vadd.f32 %v1137_v59, %v1103_v51  ;;  %v1215_v12 = vadd.f32 %v1214_v57, %v1180_v60  ;;  %v1107_v27 = vmul.f32 %v1701_v61, %v2021_v5 }
  0xf9   : > { %v1105_v14 = vmul.f32 %v2017_v3, %v590_v63  ;;  %v1702_v16 = vpop.f32.mrb[10].mxu0  ;;  %v2084_v17 = vpop.f32.mrb[10].mxu1 }
  0xfa   : > { %v1585_v2 = vpack.c.bf16 %v1702_v16, %v1701_v61  ;;  %v593_v18 = vpop.f32.mrb[11].mxu0  ;;  %v2086_v20 = vpop.f32.mrb[11].mxu1  ;;  %v1216_v22 = vadd.f32 %v1215_v12, %v1181_v1  ;;  %v1139_v23 = vadd.f32 %v1138_v10, %v1104_v58  ;;  %v1635_v3 = vpack.c.bf16 %v2084_v17, %v2079_v62 }
  0xfb   : > { %v1183_v24 = vmul.f32 %v1105_v14, %v590_v63  ;;  %v1580_v28 = vpack.c.bf16 %v593_v18, %v590_v63  ;;  %v1106_v31 = vmul.f32 %v2019_v4, %v593_v18  ;;  %v1630_v33 = vpack.c.bf16 %v2086_v20, %v2081_v0  ;;  %v1025_v59 = vpop.permute.xlu1 %1024 }
  0xfc   : > { %1651 = vst [vmem:[%s2040_s19 + $0x28] sm:$0xff] %v1585_v2   ;;  %v1140_v29 = vadd.f32 %v1139_v23, %v1105_v14  ;;  %v1217_v30 = vadd.f32 %v1216_v22, %v1182_v21  ;;  %1661 = vst [vmem:[%s2040_s19 + $0x78] sm:$0xff] %v1635_v3   ;;  %v1108_v36 = vmul.f32 %v1702_v16, %v2023_v6  ;;  %v1030_v21 = vpop.permute.xlu0 %1029 }
  0xfd   : > { %1650 = vst [vmem:[%s2040_s19 + $0x20] sm:$0xff] %v1580_v28   ;;  %v1184_v39 = vmul.f32 %v1106_v31, %v593_v18  ;;  %1660 = vst [vmem:[%s2040_s19 + $0x70] sm:$0xff] %v1630_v33   ;;  %v1185_v44 = vmul.f32 %v1701_v61, %v1107_v27 }
  0xfe   : > { %v1218_v5 = vadd.f32 %v1217_v30, %v1183_v24  ;;  %v1141_v38 = vadd.f32 %v1140_v29, %v1106_v31  ;;  %v1186_v53 = vmul.f32 %v1702_v16, %v1108_v36 }
  0xff   : > { %v1705_v41 = vpop.f32.mrb[12].mxu0  ;;  %v2103_v42 = vpop.f32.mrb[12].mxu1 }
 0x100   : > { %v606_v43 = vpop.f32.mrb[13].mxu0  ;;  %v2105_v4 = vpop.f32.mrb[13].mxu1  ;;  %v1142_v46 = vadd.f32 %v1141_v38, %v1107_v27  ;;  %v1219_v47 = vadd.f32 %v1218_v5, %v1184_v39  ;;  %v1111_v60 = vmul.f32 %v1705_v41, %v2029_v9 }
 0x101   : > { %v1109_v48 = vmul.f32 %v2025_v7, %v606_v43  ;;  %v1706_v49 = vpop.f32.mrb[14].mxu0  ;;  %v2108_v50 = vpop.f32.mrb[14].mxu1 }
 0x102   : > { %v1595_v51 = vpack.c.bf16 %v1706_v49, %v1705_v41  ;;  %v609_v6 = vpop.f32.mrb[15].mxu0  ;;  %v2110_v52 = vpop.f32.mrb[15].mxu1  ;;  %v1220_v54 = vadd.f32 %v1219_v47, %v1185_v44  ;;  %v1143_v57 = vadd.f32 %v1142_v46, %v1108_v36  ;;  %v1645_v7 = vpack.c.bf16 %v2108_v50, %v2103_v42 }
 0x103   : > { %v1187_v58 = vmul.f32 %v1109_v48, %v606_v43  ;;  %v1590_v61 = vpack.c.bf16 %v609_v6, %v606_v43  ;;  %v1110_v10 = vmul.f32 %v2027_v8, %v609_v6  ;;  %v1640_v12 = vpack.c.bf16 %v2110_v52, %v2105_v4  ;;  %v1035_v28 = vpop.permute.xlu1 %1034  ;;  %v1040_v44 = vpop.permute.xlu0 %1039 }
 0x104   : > { %1653 = vst [vmem:[%s2040_s19 + $0x38] sm:$0xff] %v1595_v51   ;;  %v1144_v63 = vadd.f32 %v1143_v57, %v1109_v48  ;;  %v1221_v1 = vadd.f32 %v1220_v54, %v1186_v53  ;;  %v1112_v14 = vmul.f32 %v1706_v49, %v2052_v25  ;;  %1663 = vst [vmem:[%s2040_s19 + $0x88] sm:$0xff] %v1645_v7  }
 0x105   : > { %1652 = vst [vmem:[%s2040_s19 + $0x30] sm:$0xff] %v1590_v61   ;;  %v1188_v18 = vmul.f32 %v1110_v10, %v609_v6  ;;  %1662 = vst [vmem:[%s2040_s19 + $0x80] sm:$0xff] %v1640_v12   ;;  %v1189_v23 = vmul.f32 %v1705_v41, %v1111_v60  ;;  %v1117_v51 = vmul.f32 %v2097_v35, %v2033_v13 }
 0x106   : > { %v1222_v16 = vadd.f32 %v1221_v1, %v1187_v58  ;;  %v1145_v2 = vadd.f32 %v1144_v63, %v1110_v10  ;;  %v1190_v29 = vmul.f32 %v1706_v49, %v1112_v14  ;;  %v1119_v7 = vmul.f32 %v2031_v11, %v1030_v21 }
 0x107   : > { %v1709_v9 = vpop.f32.mrb[16].mxu0  ;;  %v1045_v49 = vpop.permute.xlu1 %1044  ;;  %v1195_v61 = vmul.f32 %v1117_v51, %v2033_v13  ;;  %v1120_v10 = vmul.f32 %v2042_v15, %v1035_v28 }
 0x108   : > { %v622_v22 = vpop.f32.mrb[17].mxu0  ;;  %v1146_v24 = vadd.f32 %v1145_v2, %v1111_v60  ;;  %v1223_v27 = vadd.f32 %v1222_v16, %v1188_v18  ;;  %v1115_v39 = vmul.f32 %v1709_v9, %v2073_v56  ;;  %v1050_v60 = vpop.permute.xlu0 %1049  ;;  %v1197_v16 = vmul.f32 %v2031_v11, %v1119_v7 }
 0x109   : > { %v1113_v8 = vmul.f32 %v2054_v26, %v622_v22  ;;  %v1710_v3 = vpop.f32.mrb[18].mxu0  ;;  %v1198_v21 = vmul.f32 %v2042_v15, %v1120_v10  ;;  %v1122_v13 = vmul.f32 %v1045_v49, %v2064_v45 }
 0x10a   : > { %v1605_v25 = vpack.c.bf16 %v1710_v3, %v1709_v9  ;;  %v625_v30 = vpop.f32.mrb[19].mxu0  ;;  %v1224_v31 = vadd.f32 %v1223_v27, %v1189_v23  ;;  %v1147_v33 = vadd.f32 %v1146_v24, %v1112_v14  ;;  %v1116_v47 = vmul.f32 %v1710_v3, %v2095_v34 }
 0x10b   : > { %v1191_v5 = vmul.f32 %v1113_v8, %v622_v22  ;;  %v1600_v36 = vpack.c.bf16 %v625_v30, %v622_v22  ;;  %v1114_v38 = vmul.f32 %v2071_v55, %v625_v30  ;;  %v1193_v6 = vmul.f32 %v1709_v9, %v1115_v39  ;;  %v1055_v1 = vpop.permute.xlu1 %1054 }
 0x10c   : > { %1655 = vst [vmem:[%s2040_s19 + $0x48] sm:$0xff] %v1605_v25   ;;  %v1148_v41 = vadd.f32 %v1147_v33, %v1113_v8  ;;  %v1225_v43 = vadd.f32 %v1224_v31, %v1190_v29  ;;  %v1118_v55 = vmul.f32 %v1025_v59, %v2044_v19  ;;  %v1194_v57 = vmul.f32 %v1710_v3, %v1116_v47  ;;  %v1060_v9 = vpop.permute.xlu0 %1059 }
 0x10d   : > { %1654 = vst [vmem:[%s2040_s19 + $0x40] sm:$0xff] %v1600_v36   ;;  %v1192_v46 = vmul.f32 %v1114_v38, %v625_v30  ;;  %v1121_v59 = vmul.f32 %v1040_v44, %v2060_v37  ;;  %v1123_v27 = vmul.f32 %v2058_v32, %v1050_v60  ;;  %v1124_v11 = vmul.f32 %v2062_v40, %v1055_v1 }
 0x10e   : > { %v1226_v26 = vadd.f32 %v1225_v43, %v1191_v5  ;;  %v1149_v48 = vadd.f32 %v1148_v41, %v1114_v38  ;;  %v1196_v35 = vmul.f32 %v1118_v55, %v2044_v19  ;;  %v1200_v28 = vmul.f32 %v1122_v13, %v2064_v45 }
 0x10f   : > { %v1065_v24 = vpop.permute.xlu1 %1064  ;;  %v1199_v19 = vmul.f32 %v1121_v59, %v2060_v37  ;;  %v1201_v15 = vmul.f32 %v2058_v32, %v1123_v27  ;;  %v1125_v31 = vmul.f32 %v1060_v9, %v2081_v0  ;;  %v1202_v38 = vmul.f32 %v2062_v40, %v1124_v11 }
 0x110   : > { %v1150_v53 = vadd.f32 %v1149_v48, %v1115_v39  ;;  %v1227_v54 = vadd.f32 %v1226_v26, %v1192_v46  ;;  %v1070_v30 = vpop.permute.xlu0 %1069  ;;  %v1126_v37 = vmul.f32 %v1065_v24, %v2086_v20 }
 0x111   : > { %v1127_v43 = vmul.f32 %v2079_v62, %v1070_v30  ;;  %v1203_v45 = vmul.f32 %v1125_v31, %v2081_v0 }
 0x112   : > { %v1151_v56 = vadd.f32 %v1150_v53, %v1116_v47  ;;  %v1228_v58 = vadd.f32 %v1227_v54, %v1193_v6  ;;  %v1204_v47 = vmul.f32 %v1126_v37, %v2086_v20 }
 0x113   : > { %v1075_v36 = vpop.permute.xlu1 %1074  ;;  %v1205_v40 = vmul.f32 %v2079_v62, %v1127_v43 }
 0x114   : > { %v1152_v63 = vadd.f32 %v1151_v56, %v1117_v51  ;;  %v1229_v34 = vadd.f32 %v1228_v58, %v1194_v57  ;;  %v1080_v26 = vpop.permute.xlu0 %1079  ;;  %v1128_v32 = vmul.f32 %v2084_v17, %v1075_v36 }
 0x115   : > { %v1129_v6 = vmul.f32 %v1080_v26, %v2105_v4 }
 0x116   : > { %v1153_v12 = vadd.f32 %v1152_v63, %v1118_v55  ;;  %v1230_v14 = vadd.f32 %v1229_v34, %v1195_v61  ;;  %v1206_v55 = vmul.f32 %v2084_v17, %v1128_v32 }
 0x117   : > { %v1085_v51 = vpop.permute.xlu1 %1084  ;;  %v1207_v20 = vmul.f32 %v1129_v6, %v2105_v4 }
 0x118   : > { %v1154_v2 = vadd.f32 %v1153_v12, %v1119_v7  ;;  %v1231_v18 = vadd.f32 %v1230_v14, %v1196_v35  ;;  %v1130_v0 = vmul.f32 %v1085_v51, %v2110_v52  ;;  %v1090_v58 = vpop.permute.xlu0 %1089 }
 0x119   : > { %v1131_v60 = vmul.f32 %v2103_v42, %v1090_v58 }
 0x11a   : > { %v1155_v22 = vadd.f32 %v1154_v2, %v1120_v10  ;;  %v1232_v23 = vadd.f32 %v1231_v18, %v1197_v16  ;;  %v1208_v34 = vmul.f32 %v1130_v0, %v2110_v52 }
 0x11b   : > { %v1095_v63 = vpop.permute.xlu1 %1094  ;;  %v1209_v17 = vmul.f32 %v2103_v42, %v1131_v60 }
 0x11c   : > { %v1156_v8 = vadd.f32 %v1155_v22, %v1121_v59  ;;  %v1233_v3 = vadd.f32 %v1232_v23, %v1198_v21  ;;  %v1132_v62 = vmul.f32 %v2108_v50, %v1095_v63 }
 0x11e   : > { %v1157_v29 = vadd.f32 %v1156_v8, %v1122_v13  ;;  %v1234_v25 = vadd.f32 %v1233_v3, %v1199_v19  ;;  %v1210_v14 = vmul.f32 %v2108_v50, %v1132_v62 }
 0x120   : > { %v1158_v33 = vadd.f32 %v1157_v29, %v1123_v27  ;;  %v1235_v5 = vadd.f32 %v1234_v25, %v1200_v28 }
 0x122   : > { %v1159_v39 = vadd.f32 %v1158_v33, %v1124_v11  ;;  %v1236_v41 = vadd.f32 %v1235_v5, %v1201_v15 }
 0x124   : > { %v1160_v44 = vadd.f32 %v1159_v39, %v1125_v31  ;;  %v1237_v46 = vadd.f32 %v1236_v41, %v1202_v38 }
 0x126   : > { %v1161_v48 = vadd.f32 %v1160_v44, %v1126_v37  ;;  %v1238_v49 = vadd.f32 %v1237_v46, %v1203_v45 }
 0x128   : > { %v1162_v53 = vadd.f32 %v1161_v48, %v1127_v43  ;;  %v1239_v54 = vadd.f32 %v1238_v49, %v1204_v47 }
 0x12a   : > { %v1163_v57 = vadd.f32 %v1162_v53, %v1128_v32  ;;  %v1240_v56 = vadd.f32 %v1239_v54, %v1205_v40 }
 0x12c   : > { %v1164_v7 = vadd.f32 %v1163_v57, %v1129_v6  ;;  %v1241_v61 = vadd.f32 %v1240_v56, %v1206_v55 }
 0x12e   : > { %v1165_v1 = vadd.f32 %v1164_v7, %v1130_v0  ;;  %v1242_v10 = vadd.f32 %v1241_v61, %v1207_v20 }
 0x130   : > { %v1166_v35 = vadd.f32 %v1165_v1, %v1131_v60  ;;  %v1243_v12 = vadd.f32 %v1242_v10, %v1208_v34 }
 0x132   : > { %v1167_v16 = vadd.f32 %v1166_v35, %v1132_v62  ;;  %v1244_v59 = vadd.f32 %v1243_v12, %v1209_v17 }
 0x134   : > { %v1168_v2 = vrot.slane %v1167_v16, 4  ;;  %v1245_v4 = vadd.f32 %v1244_v59, %v1210_v14 }
 0x136   : > { %v1169_v18 = vadd.f32 %v1168_v2, %v1167_v16  ;;  %v1246_v9 = vrot.slane %v1245_v4, 4 }
 0x138   : > { %v1170_v21 = vrot.slane %v1169_v18, 2  ;;  %v1247_v13 = vadd.f32 %v1246_v9, %v1245_v4 }
 0x13a   : > { %v1171_v22 = vadd.f32 %v1170_v21, %v1169_v18  ;;  %v1248_v23 = vrot.slane %v1247_v13, 2 }
 0x13c   : > { %v1172_v52 = vrot.slane %v1171_v22, 1  ;;  %v1249_v24 = vadd.f32 %v1248_v23, %v1247_v13 }
 0x13e   : > { %v1173_v42 = vadd.f32 %v1172_v52, %v1171_v22  ;;  %v1250_v27 = vrot.slane %v1249_v24, 1 }
 0x140   : > { %1174 = vst [vmem:[%s317_s22] sm:$0x1] %v1173_v42  ;;  %v1251_v50 = vadd.f32 %v1250_v27, %v1249_v24 }
 0x142   : > { %1252 = vst [vmem:[%s317_s22 + $0x1] sm:$0x1] %v1251_v50 }
 0x143 PF: > { %s15_s17 = sadd.s32 1, %s1806_s17   ;;  %s2180_s15 = smov %s1802_s16 }
 0x144   : > { %p12_p5 = scmp.ge.s32.totalorder %s15_s17, 4   ;;  %s2181_s16 = smov %s2183_s18 }
 0x146   :  { %14 = sbr.rel (!%p12_p5) target bundleno = 2 (0x2), region = 80 }

</bundles_post_ra>
